<compile_context>
chip_gen: v5e
topology: v5e:2x2
jax: 0.10.0
libtpu: 0.0.40
codegen_flags: <defaults>
</compile_context>

<pallas_src>
import functools
import math

import jax
import jax.numpy as jnp
from jax.experimental import pallas as pl
from jax.experimental.pallas import tpu as pltpu


def _round_up(x, m):
    return (x + m - 1) // m * m


def patient_embedding_kernel(tok_ref, tbl_ref, out_ref, *, value_col):
    """tok_ref: (tile_n, 4) int32 = [code, minute, bitcast(value), 0]
       tbl_ref: (K_pad, d_model) f32 fused [emb | value column | pe] table
       out_ref: (tile_n, d_model) f32
    """
    n = tok_ref.shape[0]
    k = tbl_ref.shape[0]

    codes = tok_ref[:, 0:1]                                  # (n, 1) int32
    minutes = tok_ref[:, 1:2]                                # (n, 1) int32
    vals = pltpu.bitcast(tok_ref[:, 2:3], jnp.float32)       # (n, 1) f32

    # Combined "one-hot": code one-hot, raw value at col `value_col`,
    # minute one-hot shifted past the value column.  Column ranges are disjoint.
    col = jax.lax.broadcasted_iota(jnp.int32, (n, k), 1)
    onehot = ((col == codes).astype(jnp.float32)
              + (col == minutes + (value_col + 1)).astype(jnp.float32)
              + jnp.where(col == value_col, vals, 0.0))      # (n, k) f32

    # Single MXU matmul produces the full d_model row (code emb | value | pe).
    out_ref[...] = jnp.dot(onehot, tbl_ref[...],
                           preferred_element_type=jnp.float32)


def build_fused_table(emb_table, pe_table):
    """[emb | value column | pe] fused lookup table, padded to K_pad rows."""
    vocab, emb_dim = emb_table.shape
    max_len, half = pe_table.shape
    k_pad = _round_up(vocab + 1 + max_len, 128)
    d_model = emb_dim + 1 + half
    tbl = jnp.zeros((k_pad, d_model), jnp.float32)
    tbl = tbl.at[:vocab, :emb_dim].set(emb_table.astype(jnp.float32))
    tbl = tbl.at[vocab, emb_dim].set(1.0)
    tbl = tbl.at[vocab + 1:vocab + 1 + max_len, emb_dim + 1:].set(
        pe_table.astype(jnp.float32))
    return tbl


def patient_embedding(codes, values, minutes, emb_table, pe_table, *, tile_n=512):
    """Fused Pallas forward of PatientEmbedding: (B, S) -> (B, S, d_model)."""
    B, S = codes.shape
    N = B * S
    vocab, emb_dim = emb_table.shape
    max_len, half = pe_table.shape
    d_model = emb_dim + 1 + half

    fused_tbl = build_fused_table(emb_table, pe_table)
    k_pad = fused_tbl.shape[0]

    # Row tile: multiple of 8; 512 is comfortably within VMEM on all chips
    # (incl. v7x's 64 MiB).  Shrink for tiny problems so we never over-pad.
    tile_n = min(tile_n, _round_up(N, 8))
    n_pad = _round_up(N, tile_n)
    grid = (n_pad // tile_n,)

    # Pack the three per-token scalars into one (N, 4) int32 array: one input
    # DMA per grid step instead of three.
    codes_f = codes.reshape(N).astype(jnp.int32)
    minutes_f = minutes.reshape(N).astype(jnp.int32)
    value_bits = jax.lax.bitcast_convert_type(
        values.reshape(N).astype(jnp.float32), jnp.int32)
    tok = jnp.stack([codes_f, minutes_f, value_bits, jnp.zeros_like(codes_f)],
                    axis=-1)                                  # (N, 4) int32
    tok = jnp.pad(tok, ((0, n_pad - N), (0, 0)))

    kernel = functools.partial(patient_embedding_kernel, value_col=vocab)

    out = pl.pallas_call(
        kernel,
        out_shape=jax.ShapeDtypeStruct((n_pad, d_model), jnp.float32),
        grid_spec=pltpu.PrefetchScalarGridSpec(
            num_scalar_prefetch=0,
            grid=grid,
            in_specs=[
                pl.BlockSpec((tile_n, 4), lambda i: (i, 0)),        # tokens
                pl.BlockSpec((k_pad, d_model), lambda i: (0, 0)),   # resident table
            ],
            out_specs=pl.BlockSpec((tile_n, d_model), lambda i: (i, 0)),
        ),
        compiler_params=pltpu.CompilerParams(
            dimension_semantics=("parallel",)),
        cost_estimate=pl.CostEstimate(
            flops=2 * n_pad * k_pad * d_model,
            transcendentals=0,
            bytes_accessed=(n_pad * 4 * 4 + k_pad * d_model * 4
                            + n_pad * d_model * 4)),
    )(tok, fused_tbl)

    return out[:N].reshape(B, S, d_model)


def make_time_encoding(max_len, half):
    # Matches the PyTorch sinusoidal construction (pe squeezed to (max_len, half)).
    position = jnp.arange(max_len, dtype=jnp.float32)[:, None]          # (L, 1)
    div_term = jnp.exp(jnp.arange(0, half, 2, dtype=jnp.float32)
                       * (-math.log(10000.0) / half))                   # (half/2,)
    pe = jnp.zeros((max_len, half), dtype=jnp.float32)
    pe = pe.at[:, 0::2].set(jnp.sin(position * div_term))
    pe = pe.at[:, 1::2].set(jnp.cos(position * div_term))
    return pe


if __name__ == "__main__":
    # Module hyperparameters.
    d_model = 32
    max_len = 180
    num_tokenizer_codes = 20            # len(tokenizer_codes)
    vocab = 1 + num_tokenizer_codes     # 21
    half = d_model // 2                 # 16
    emb_dim = half - 1                  # 15

    key = jax.random.PRNGKey(0)
    (k_emb, k_codes, k_vals, k_min,
     k2_codes, k2_vals, k2_min) = jax.random.split(key, 7)

    # nn.Embedding weight ~ N(0, 1); padding_idx=0 row zeroed.
    emb_table = jax.random.normal(k_emb, (vocab, emb_dim), dtype=jnp.float32)
    emb_table = emb_table.at[0].set(0.0)
    pe_table = make_time_encoding(max_len, half)

    def reference(c, v, m):
        return jnp.concatenate(
            [emb_table[c], v[..., None], pe_table[m]], axis=-1)

    # Small shape consistent with the module (batch=2, seq=8).
    B, S = 2, 8
    codes = jax.random.randint(k_codes, (B, S), 0, vocab, dtype=jnp.int32)
    values = jax.random.normal(k_vals, (B, S), dtype=jnp.float32)
    minutes = jax.random.randint(k_min, (B, S), 0, max_len, dtype=jnp.int32)

    out = jax.block_until_ready(
        patient_embedding(codes, values, minutes, emb_table, pe_table))
    assert out.shape == (B, S, d_model)
    assert jnp.allclose(out, reference(codes, values, minutes),
                        atol=1e-5, rtol=1e-5)

    # Slightly larger case that exercises the gridded / padded path
    # (N = 720 -> padded to 1024, grid of 2 parallel tiles).
    B2, S2 = 4, 180
    codes2 = jax.random.randint(k2_codes, (B2, S2), 0, vocab, dtype=jnp.int32)
    values2 = jax.random.normal(k2_vals, (B2, S2), dtype=jnp.float32)
    minutes2 = jax.random.randint(k2_min, (B2, S2), 0, max_len, dtype=jnp.int32)

    out2 = jax.block_until_ready(
        patient_embedding(codes2, values2, minutes2, emb_table, pe_table))
    assert out2.shape == (B2, S2, d_model)
    assert jnp.allclose(out2, reference(codes2, values2, minutes2),
                        atol=1e-5, rtol=1e-5)

    print("KERNEL_OK")
</pallas_src>

<mosaic_0001>
module attributes {stable_mosaic.version = 11 : i64} {
  func.func @patient_embedding_kernel(%arg0: i32, %arg1: memref<16x4xi32, #tpu.memory_space<vmem>>, %arg2: memref<256x32xf32, #tpu.memory_space<vmem>>, %arg3: memref<16x32xf32, #tpu.memory_space<vmem>>) attributes {dimension_semantics = [#tpu.dimension_semantics<parallel>], iteration_bounds = array<i64: 1>, scalar_prefetch = 0 : i64, scratch_operands = 0 : i64, tpu.core_type = #tpu.core_type<tc>, window_params = [{transform_indices = @transform_0, window_bounds = array<i64: 16, 4>}, {pipeline_mode = #tpu.pipeline_mode<synchronous>, transform_indices = @transform_1, window_bounds = array<i64: 256, 32>}, {transform_indices = @transform_2, window_bounds = array<i64: 16, 32>}]} {
    %c0 = arith.constant 0 : index
    %c0_0 = arith.constant 0 : index
    %0 = vector.load %arg1[%c0, %c0_0] : memref<16x4xi32, #tpu.memory_space<vmem>>, vector<16x1xi32>
    %c0_1 = arith.constant 0 : index
    %c1 = arith.constant 1 : index
    %1 = vector.load %arg1[%c0_1, %c1] : memref<16x4xi32, #tpu.memory_space<vmem>>, vector<16x1xi32>
    %c0_2 = arith.constant 0 : index
    %c2 = arith.constant 2 : index
    %2 = vector.load %arg1[%c0_2, %c2] : memref<16x4xi32, #tpu.memory_space<vmem>>, vector<16x1xi32>
    %3 = tpu.bitcast %2 : vector<16x1xi32> -> vector<16x1xf32>
    %4 = tpu.iota {dimensions = array<i32: 1>} : vector<16x256xi32>
    %5 = vector.broadcast %0 : vector<16x1xi32> to vector<16x256xi32>
    %6 = arith.cmpi eq, %4, %5 : vector<16x256xi32>
    %7 = arith.extui %6 : vector<16x256xi1> to vector<16x256xi32>
    %8 = arith.sitofp %7 : vector<16x256xi32> to vector<16x256xf32>
    %c22_i32 = arith.constant 22 : i32
    %9 = vector.broadcast %c22_i32 : i32 to vector<16x1xi32>
    %10 = arith.addi %1, %9 : vector<16x1xi32>
    %11 = vector.broadcast %10 : vector<16x1xi32> to vector<16x256xi32>
    %12 = arith.cmpi eq, %4, %11 : vector<16x256xi32>
    %13 = arith.extui %12 : vector<16x256xi1> to vector<16x256xi32>
    %14 = arith.sitofp %13 : vector<16x256xi32> to vector<16x256xf32>
    %15 = arith.addf %8, %14 : vector<16x256xf32>
    %c21_i32 = arith.constant 21 : i32
    %16 = vector.broadcast %c21_i32 : i32 to vector<16x256xi32>
    %17 = arith.cmpi eq, %4, %16 : vector<16x256xi32>
    %cst = arith.constant 0.000000e+00 : f32
    %18 = vector.shape_cast %3 : vector<16x1xf32> to vector<16x1xf32>
    %19 = vector.broadcast %18 : vector<16x1xf32> to vector<16x256xf32>
    %20 = vector.broadcast %cst : f32 to vector<16x256xf32>
    %21 = arith.select %17, %19, %20 : vector<16x256xi1>, vector<16x256xf32>
    %22 = arith.addf %15, %21 : vector<16x256xf32>
    %c0_3 = arith.constant 0 : index
    %c0_4 = arith.constant 0 : index
    %23 = vector.load %arg2[%c0_3, %c0_4] : memref<256x32xf32, #tpu.memory_space<vmem>>, vector<256x32xf32>
    %cst_5 = arith.constant dense<0.000000e+00> : vector<16x32xf32>
    %24 = tpu.matmul %22, %23, %cst_5 {dimension_numbers = #tpu.dot_dimension_numbers<[1], [0], [0], [1], [0, 0, 1, 1], [], []>} : vector<16x256xf32>, vector<256x32xf32>, vector<16x32xf32> -> vector<16x32xf32>
    %c0_6 = arith.constant 0 : index
    %c0_7 = arith.constant 0 : index
    %25 = vector.load %arg3[%c0_6, %c0_7] : memref<16x32xf32, #tpu.memory_space<vmem>>, vector<16x32xf32>
    tpu.vector_store %arg3[%c0_6, %c0_7], %24 {strides = array<i32>} : memref<16x32xf32, #tpu.memory_space<vmem>>, vector<16x32xf32>,
    return
  }
  func.func @transform_0(%arg0: i32) -> (i32, i32) {
    %c0_i32 = arith.constant 0 : i32
    %c0_i32_0 = arith.constant 0 : i32
    return %arg0, %c0_i32 : i32, i32
  }
  func.func @transform_1(%arg0: i32) -> (i32, i32) {
    %c0_i32 = arith.constant 0 : i32
    %c0_i32_0 = arith.constant 0 : i32
    %c0_i32_1 = arith.constant 0 : i32
    return %c0_i32, %c0_i32_0 : i32, i32
  }
  func.func @transform_2(%arg0: i32) -> (i32, i32) {
    %c0_i32 = arith.constant 0 : i32
    %c0_i32_0 = arith.constant 0 : i32
    return %arg0, %c0_i32 : i32, i32
  }
}

</mosaic_0001>

<bundles_post_ra>
// kernel: tpu_custom_call.1
= control target key start
LH: loop header
LB: loop body
LE: loop exit
PB: predicated region body
PF: predicated region fallthrough
CT: control target
= control target key end

     0   :  { %v256_v3 = vmov 2   ;;  %v257_v4 = vmov 0   ;;  %v258_v7 = vmov 1   ;;  %s388_s0 = inlined_call_operand.vmem [shape: s32[16,4], index: 0, kind: input, shape index: {}]   ;;  %s389_s1 = inlined_call_operand.vmem [shape: f32[256,32], index: 1, kind: input, shape index: {}]   ;;  %s390_s2 = inlined_call_operand.hbm [shape: f32[16,32], index: 2, kind: output, shape index: {}]  }
   0x1   :  { %v13_v0 = vld [vmem:[%s388_s0 + $0x8] sm:$0xff]  ;;  %v12_v1 = vld [vmem:[%s388_s0] sm:$0xff]  ;;  %v108_v2 = vld [vmem:[%s389_s1 + $0xf8] sm:$0xff]  ;;  %225 = vset.pattern.permute.xlu1 %v256_v3  ;;  %223 = vset.pattern.permute.xlu0 %v257_v4 }
   0x2   :  { %v35_v5 = vadd.s32 22, %v12_v1  ;;  %66 = vperm.xlu1 %225, %v13_v0   ;;  %21 = vperm.xlu0 %223, %v13_v0   ;;  %v92_v6 = vld [vmem:[%s389_s1 + $0x78] sm:$0xff]  ;;  %v107_v8 = vld [vmem:[%s389_s1 + $0xf0] sm:$0xff]  ;;  %v106_v10 = vld [vmem:[%s389_s1 + $0xe8] sm:$0xff] }
   0x3   :  { %227 = vset.pattern.permute.xlu2 %v258_v7  ;;  %132 = vmatpush.msra.mxu1 %v108_v2  ;;  %v91_v9 = vld [vmem:[%s389_s1 + $0x70] sm:$0xff]  ;;  %v90_v11 = vld [vmem:[%s389_s1 + $0x68] sm:$0xff] }
   0x4   :  { %38 = vperm.xlu2 %227, %v35_v5   ;;  %200 = vmatpush.msra.mxu3 %v108_v2 }
   0x5   :  { %109 = vmatpush.msra.mxu0 %v92_v6  ;;  %184 = vmatpush.msra.mxu2 %v92_v6 }
   0x6   :  { %133 = vmatpush.msra.mxu1 %v107_v8  ;;  %201 = vmatpush.msra.mxu3 %v107_v8 }
   0x7   :  { %7 = vsyncpa [#allocation3], 0  ;;  %v36_v12 = vadd.s32 22, %v13_v0  ;;  %110 = vmatpush.msra.mxu0 %v91_v9  ;;  %185 = vmatpush.msra.mxu2 %v91_v9  ;;  %v105_v13 = vld [vmem:[%s389_s1 + $0xe0] sm:$0xff]  ;;  %v104_v15 = vld [vmem:[%s389_s1 + $0xd8] sm:$0xff]  ;;  %v14_v39 = vlaneseq  ;;  %v259_v46 = vmov 0.0  }
   0x8   :  { %134 = vmatpush.msra.mxu1 %v106_v10  ;;  %202 = vmatpush.msra.mxu3 %v106_v10  ;;  %v89_v14 = vld [vmem:[%s389_s1 + $0x60] sm:$0xff]  ;;  %v88_v16 = vld [vmem:[%s389_s1 + $0x58] sm:$0xff]  ;;  %v103_v17 = vld [vmem:[%s389_s1 + $0xd0] sm:$0xff]  ;;  %vm155_vm9 = vcmask 261120   ;;  %s164_s21 = sshll.u32 %s390_s2, 4  ;;  %s261_s22 = smov 128   ;;  %s165_s21 = int_to_ptr.hbm [resolvable:$true] %s164_s21 }
   0x9   :  { %111 = vmatpush.msra.mxu0 %v90_v11  ;;  %186 = vmatpush.msra.mxu2 %v90_v11  ;;  %v87_v18 = vld [vmem:[%s389_s1 + $0x50] sm:$0xff]  ;;  %v102_v19 = vld [vmem:[%s389_s1 + $0xc8] sm:$0xff]  ;;  %v101_v21 = vld [vmem:[%s389_s1 + $0xc0] sm:$0xff]  ;;  %v15_v41 = vand.u32 127, %v14_v39  ;;  %s262_s23 = smov 8  }
   0xa   :  { %226 = vset.pattern.permute.xlu1 %v257_v4  ;;  %224 = vset.pattern.permute.xlu0 %v258_v7  ;;  %v86_v20 = vld [vmem:[%s389_s1 + $0x48] sm:$0xff]  ;;  %v85_v22 = vld [vmem:[%s389_s1 + $0x40] sm:$0xff]  ;;  %v100_v23 = vld [vmem:[%s389_s1 + $0xb8] sm:$0xff] }
   0xb   :  { %41 = vperm.xlu0 %224, %v36_v12   ;;  %18 = vperm.xlu1 %226, %v12_v1   ;;  %v84_v24 = vld [vmem:[%s389_s1 + $0x38] sm:$0xff]  ;;  %v99_v25 = vld [vmem:[%s389_s1 + $0xb0] sm:$0xff]  ;;  %v98_v27 = vld [vmem:[%s389_s1 + $0xa8] sm:$0xff]  ;;  %v16_v44 = vadd.s32 128, %v15_v41  ;;  %vm59_vm4 = vcmp.eq.s32.totalorder %v15_v41, 21 }
   0xc   :  { %228 = vset.pattern.permute.xlu2 %v256_v3  ;;  %135 = vmatpush.msra.mxu1 %v105_v13  ;;  %v83_v26 = vld [vmem:[%s389_s1 + $0x30] sm:$0xff]  ;;  %v82_v28 = vld [vmem:[%s389_s1 + $0x28] sm:$0xff]  ;;  %v97_v29 = vld [vmem:[%s389_s1 + $0xa0] sm:$0xff] }
   0xd   :  { %62 = vperm.xlu2 %228, %v12_v1   ;;  %203 = vmatpush.msra.mxu3 %v105_v13  ;;  %v81_v30 = vld [vmem:[%s389_s1 + $0x20] sm:$0xff]  ;;  %v96_v31 = vld [vmem:[%s389_s1 + $0x98] sm:$0xff]  ;;  %v95_v33 = vld [vmem:[%s389_s1 + $0x90] sm:$0xff] }
   0xe   :  { %112 = vmatpush.msra.mxu0 %v89_v14  ;;  %187 = vmatpush.msra.mxu2 %v89_v14  ;;  %v80_v32 = vld [vmem:[%s389_s1 + $0x18] sm:$0xff]  ;;  %v79_v34 = vld [vmem:[%s389_s1 + $0x10] sm:$0xff]  ;;  %v94_v35 = vld [vmem:[%s389_s1 + $0x88] sm:$0xff] }
   0xf   :  { %136 = vmatpush.msra.mxu1 %v104_v15  ;;  %204 = vmatpush.msra.mxu3 %v104_v15  ;;  %v78_v36 = vld [vmem:[%s389_s1 + $0x8] sm:$0xff]  ;;  %v93_v37 = vld [vmem:[%s389_s1 + $0x80] sm:$0xff] }
  0x10   :  { %113 = vmatpush.msra.mxu0 %v88_v16  ;;  %188 = vmatpush.msra.mxu2 %v88_v16  ;;  %v77_v38 = vld [vmem:[%s389_s1] sm:$0xff]  ;;  %s260_s1 = smov [#allocation2]  }
  0x11   :  { %137 = vmatpush.msra.mxu1 %v103_v17  ;;  %205 = vmatpush.msra.mxu3 %v103_v17  ;;  %s162_s18 = sshll.u32 %s260_s1, 4  ;;  %s163_s18 = int_to_ptr.vmem [resolvable:$true] %s162_s18 }
  0x12   :  { %114 = vmatpush.msra.mxu0 %v87_v18  ;;  %189 = vmatpush.msra.mxu2 %v87_v18 }
  0x13   :  { %138 = vmatpush.msra.mxu1 %v102_v19  ;;  %206 = vmatpush.msra.mxu3 %v102_v19 }
  0x14   :  { %115 = vmatpush.msra.mxu0 %v86_v20  ;;  %190 = vmatpush.msra.mxu2 %v86_v20 }
  0x15   :  { %139 = vmatpush.msra.mxu1 %v101_v21  ;;  %207 = vmatpush.msra.mxu3 %v101_v21 }
  0x16   :  { %116 = vmatpush.msra.mxu0 %v85_v22  ;;  %191 = vmatpush.msra.mxu2 %v85_v22 }
  0x17   :  { %140 = vmatpush.msra.mxu1 %v100_v23  ;;  %208 = vmatpush.msra.mxu3 %v100_v23 }
  0x18   :  { %229 = vset.pattern.permute.xlu0 %v256_v3  ;;  %117 = vmatpush.msra.mxu0 %v84_v24 }
  0x19   :  { %192 = vmatpush.msra.mxu2 %v84_v24  ;;  %141 = vmatpush.msra.mxu1 %v99_v25 }
  0x1a   :  { %209 = vmatpush.msra.mxu3 %v99_v25  ;;  %118 = vmatpush.msra.mxu0 %v83_v26 }
  0x1b   :  { %193 = vmatpush.msra.mxu2 %v83_v26  ;;  %142 = vmatpush.msra.mxu1 %v98_v27 }
  0x1c   :  { %210 = vmatpush.msra.mxu3 %v98_v27  ;;  %119 = vmatpush.msra.mxu0 %v82_v28 }
  0x1d   :  { %194 = vmatpush.msra.mxu2 %v82_v28  ;;  %143 = vmatpush.msra.mxu1 %v97_v29 }
  0x1e   :  { %211 = vmatpush.msra.mxu3 %v97_v29  ;;  %120 = vmatpush.msra.mxu0 %v81_v30 }
  0x1f   :  { %195 = vmatpush.msra.mxu2 %v81_v30  ;;  %144 = vmatpush.msra.mxu1 %v96_v31 }
  0x20   :  { %212 = vmatpush.msra.mxu3 %v96_v31  ;;  %121 = vmatpush.msra.mxu0 %v80_v32 }
  0x21   :  { %196 = vmatpush.msra.mxu2 %v80_v32  ;;  %145 = vmatpush.msra.mxu1 %v95_v33 }
  0x22   :  { %213 = vmatpush.msra.mxu3 %v95_v33  ;;  %122 = vmatpush.msra.mxu0 %v79_v34 }
  0x23   :  { %197 = vmatpush.msra.mxu2 %v79_v34  ;;  %146 = vmatpush.msra.mxu1 %v94_v35 }
  0x24   :  { %214 = vmatpush.msra.mxu3 %v94_v35  ;;  %123 = vmatpush.msra.mxu0 %v78_v36 }
  0x25   :  { %198 = vmatpush.msra.mxu2 %v78_v36  ;;  %147 = vmatpush.msra.mxu1 %v93_v37 }
  0x26   :  { %215 = vmatpush.msra.mxu3 %v93_v37  ;;  %124 = vmatpush.msra.mxu0 %v77_v38 }
  0x27   :  { %199 = vmatpush.msra.mxu2 %v77_v38 }
  0x5e   :  { %v39_v40 = vpop.permute.xlu2 %38 }
  0x5f   :  { %vm43_vm0 = vcmp.eq.s32.totalorder %v15_v41, %v39_v40  ;;  %vm44_vm3 = vcmp.eq.s32.totalorder %v16_v44, %v39_v40 }
  0x60   :  { %v180_v47 = vsel %vm43_vm0, 1.0, %v259_v46  ;;  %v181_v52 = vsel %vm44_vm3, 1.0, %v259_v46 }
  0x67   :  { %v63_v45 = vpop.permute.xlu2 %62 }
  0x68   :  { %v69_v51 = vsel %vm59_vm4, %v63_v45, 0.0 }
  0x74   :  { %v22_v42 = vpop.permute.xlu0 %21  ;;  %v67_v43 = vpop.permute.xlu1 %66 }
  0x75   :  { %vm25_vm1 = vcmp.eq.s32.totalorder %v15_v41, %v22_v42  ;;  %vm26_vm2 = vcmp.eq.s32.totalorder %v16_v44, %v22_v42  ;;  %v71_v62 = vsel %vm59_vm4, %v67_v43, 0.0 }
  0x76   :  { %v178_v48 = vsel %vm25_vm1, 1.0, %v259_v46  ;;  %v179_v53 = vsel %vm26_vm2, 1.0, %v259_v46 }
  0x7d   :  { %v42_v49 = vpop.permute.xlu0 %41  ;;  %v19_v50 = vpop.permute.xlu1 %18 }
  0x7e   :  { %vm45_vm5 = vcmp.eq.s32.totalorder %v15_v41, %v42_v49  ;;  %vm46_vm6 = vcmp.eq.s32.totalorder %v16_v44, %v42_v49  ;;  %vm23_vm7 = vcmp.eq.s32.totalorder %v15_v41, %v19_v50  ;;  %vm24_vm8 = vcmp.eq.s32.totalorder %v16_v44, %v19_v50 }
  0x7f   :  { %v182_v54 = vsel %vm45_vm5, 1.0, %v259_v46  ;;  %v183_v55 = vsel %vm46_vm6, 1.0, %v259_v46  ;;  %v176_v56 = vsel %vm23_vm7, 1.0, %v259_v46  ;;  %v177_v57 = vsel %vm24_vm8, 1.0, %v259_v46 }
  0x80   :  { %v57_v58 = vadd.f32 %v182_v54, %v178_v48  ;;  %v55_v59 = vadd.f32 %v180_v47, %v176_v56  ;;  %v56_v60 = vadd.f32 %v181_v52, %v177_v57  ;;  %v58_v61 = vadd.f32 %v183_v55, %v179_v53 }
  0x82   :  { %148 = vmatmul.f32.vlgmr.msra.gmra.mxu1 %v56_v60  ;;  %151 = vmatmul.f32.vlgmr.msra.gmra.mxu3 %v58_v61  ;;  %v73_v63 = vadd.f32 %v69_v51, %v55_v59  ;;  %v75_v0 = vadd.f32 %v71_v62, %v57_v58 }
  0x84   :  { %125 = vmatmul.f32.vlgmr.msra.gmra.mxu0 %v73_v63  ;;  %128 = vmatmul.f32.vlgmr.msra.gmra.mxu2 %v75_v0 }
  0xff   :  { %v149_v1 = vpop.f32.mrf.mxu1 }
 0x101   :  { %v126_v2 = vpop.f32.mrf.mxu0 }
 0x102   :  { %v150_v3 = vadd.f32 %v149_v1, %v126_v2 }
 0x104   :  { %156 = vst.msk [vmem:[#allocation2] sm:$0xff] %vm155_vm9, %v150_v3 }
 0x105   :  { %v152_v4 = vpop.f32.mrf.mxu3 }
 0x107   :  { %v129_v5 = vpop.f32.mrf.mxu2 }
 0x108   :  { %v153_v6 = vadd.f32 %v152_v4, %v129_v5 }
 0x10a   :  { %157 = vst.msk [vmem:[#allocation2 + $0x8] sm:$0xff] %vm155_vm9, %v153_v6 }
 0x10b   :  { %170 = dma.vmem_to_hbm [thread:$0]  %s163_s18, 256, %s165_s21, [#allocation3], %s261_s22, %s261_s22, %s262_s23  }
 0x10c   :  { %254 = dma.done.wait [#allocation3], 256  }
 0x10d   :  { %255 = vsyncadd [#allocation3], 4294967040 }
 0x10e   :  { %175 = vsyncpa [#allocation3], 1 }

</bundles_post_ra>
